<compile_context>
chip_gen: v7x
topology: tpu7x:2x2x1
jax: 0.10.0
libtpu: 0.0.40
codegen_flags: <defaults>
</compile_context>

<pallas_src>
import functools

import jax
import jax.numpy as jnp
from jax.experimental import pallas as pl
from jax.experimental.pallas import tpu as pltpu


def _round_up(x, m):
    return ((x + m - 1) // m) * m


def _spatial_gradients_kernel(inp_ref, tgt_ref, smooth_ref, huber_ref, *,
                              H, W, clamp_value, sigma):
    """One batch element per grid step.

    inp_ref / tgt_ref : [1, C, Hp, Wp] padded blocks (pad value 1.0 -> log 0,
                        reproducing conv2d padding=1 on the log maps).
    smooth_ref        : [1, 8, 128]  per-batch sum of squared Sobel grads of
                        (log input - log target).
    huber_ref         : [1, 8, 128]  per-batch sum of Huber(|g_in - g_tgt|).
    """
    clamp = jnp.float32(clamp_value)

    # log(clamp(.)) per channel, then reduce over channels (conv with the
    # channel-repeated Sobel kernel == conv of the channel-summed log map).
    li = jnp.log(jnp.maximum(inp_ref[0], clamp))        # [C, Hp, Wp]
    lt = jnp.log(jnp.maximum(tgt_ref[0], clamp))        # [C, Hp, Wp]
    si = jnp.sum(li, axis=0)                            # [Hp, Wp]
    st = jnp.sum(lt, axis=0)                            # [Hp, Wp]
    sd = si - st                                        # log diff map

    def sobel_sq(p):
        # p is the 1-pixel-padded (H+2, W+2 live region of the) log map.
        p00 = p[0:H,     0:W]
        p01 = p[0:H,     1:W + 1]
        p02 = p[0:H,     2:W + 2]
        p10 = p[1:H + 1, 0:W]
        p12 = p[1:H + 1, 2:W + 2]
        p20 = p[2:H + 2, 0:W]
        p21 = p[2:H + 2, 1:W + 1]
        p22 = p[2:H + 2, 2:W + 2]
        # 1/8 * Sobel, cross-correlation (matches F.conv2d).
        gx = ((p00 - p02) + 2.0 * (p10 - p12) + (p20 - p22)) * 0.125
        gy = ((p00 + 2.0 * p01 + p02) - (p20 + 2.0 * p21 + p22)) * 0.125
        return gx * gx + gy * gy                        # [H, W]

    gd = sobel_sq(sd)            # gradients_diff   (smooth_error term)
    gi = sobel_sq(si)            # gradients_input
    gt = sobel_sq(st)            # gradients_target

    # HuberLoss(sigma=3), mask=None path.
    n = jnp.abs(gi - gt)
    inv_s2 = jnp.float32(1.0 / (sigma * sigma))
    hub = jnp.where(n < inv_s2,
                    0.5 * (sigma * n) * (sigma * n),
                    n - 0.5 * inv_s2)

    def to_block(x):
        # [H, W] -> scalar partial sum, emitted as a lane-dense (1,8,128) block.
        s = jnp.sum(jnp.sum(x, axis=1, keepdims=True), axis=0, keepdims=True)
        return jnp.broadcast_to(s, (1, 8, 128))

    smooth_ref[...] = to_block(gd)
    huber_ref[...] = to_block(hub)


def _run_kernel(inp_p, tgt_p, *, H, W, clamp_value, sigma):
    B, C, Hp, Wp = inp_p.shape
    kernel = functools.partial(_spatial_gradients_kernel, H=H, W=W,
                               clamp_value=clamp_value, sigma=sigma)
    return pl.pallas_call(
        kernel,
        out_shape=(jax.ShapeDtypeStruct((B, 8, 128), jnp.float32),
                   jax.ShapeDtypeStruct((B, 8, 128), jnp.float32)),
        grid=(B,),
        in_specs=[
            pl.BlockSpec((1, C, Hp, Wp), lambda b: (b, 0, 0, 0)),
            pl.BlockSpec((1, C, Hp, Wp), lambda b: (b, 0, 0, 0)),
        ],
        out_specs=(
            pl.BlockSpec((1, 8, 128), lambda b: (b, 0, 0)),
            pl.BlockSpec((1, 8, 128), lambda b: (b, 0, 0)),
        ),
        compiler_params=pltpu.CompilerParams(
            dimension_semantics=("parallel",)),
    )(inp_p, tgt_p)


class SpatialGradientsLossPallas:
    """JAX / Pallas port of the PyTorch SpatialGradientsLoss forward pass."""

    def __init__(self, kernel_size=3, use_logs=True, clamp_value=1e-07,
                 size_average=False, smooth_error=True, gradient_loss_on=True):
        assert kernel_size == 3, "only the 3x3 Sobel kernel of the spec is ported"
        self.kernel_size = kernel_size
        self.use_logs = use_logs
        self.clamp_value = float(clamp_value)
        self.size_average = size_average
        self.smooth_error = smooth_error
        self.gradient_loss_on = gradient_loss_on
        self.sigma = 3.0                       # HuberLoss(sigma=3)

    def __call__(self, input, target, mask=None):
        if mask is not None:
            # TODO(synk): mask path (mask.repeat(1,3,1,1) masked sum and
            # masked Huber mean) not ported.
            raise NotImplementedError("mask is not supported in the Pallas port")

        B, C, H, W = input.shape
        Hp = _round_up(H + 2, 8)
        Wp = _round_up(W + 2, 128)
        # Pad with 1.0: log(clamp(1.0)) == 0 reproduces conv2d's zero padding
        # of the log maps; extra rows/cols beyond the halo are never read.
        pad = ((0, 0), (0, 0), (1, Hp - H - 1), (1, Wp - W - 1))
        inp_p = jnp.pad(input.astype(jnp.float32), pad, constant_values=1.0)
        tgt_p = jnp.pad(target.astype(jnp.float32), pad, constant_values=1.0)

        smooth_p, huber_p = _run_kernel(inp_p, tgt_p, H=H, W=W,
                                        clamp_value=self.clamp_value,
                                        sigma=self.sigma)
        smooth_sum = jnp.sum(smooth_p[:, 0, 0])
        huber_sum = jnp.sum(huber_p[:, 0, 0])

        # Conv output has a single channel (Sobel repeated over C, summed).
        n_out = float(B * 1 * H * W)

        total = jnp.float32(0.0)
        if self.smooth_error:
            smooth_loss = smooth_sum
            if self.size_average:
                smooth_loss = smooth_loss / jnp.float32(n_out)
            total = total + smooth_loss
        if self.gradient_loss_on:
            # HuberLoss size_average=True, mask=None -> mean over B*1*H*W.
            total = total + huber_sum / jnp.float32(n_out)
        return total


if __name__ == "__main__":
    B, C, H, W = 2, 4, 16, 16
    key = jax.random.PRNGKey(0)
    k1, k2 = jax.random.split(key)
    inp = jax.random.uniform(k1, (B, C, H, W), jnp.float32, 0.1, 2.0)
    tgt = jax.random.uniform(k2, (B, C, H, W), jnp.float32, 0.1, 2.0)

    loss_fn = SpatialGradientsLossPallas()
    out = loss_fn(inp, tgt)
    jax.block_until_ready(out)
    print("KERNEL_OK")
</pallas_src>

<mosaic_0001>
module attributes {stable_mosaic.version = 11 : i64} {
  func.func @_spatial_gradients_kernel(%arg0: i32, %arg1: memref<1x4x24x128xf32, #tpu.memory_space<vmem>>, %arg2: memref<1x4x24x128xf32, #tpu.memory_space<vmem>>, %arg3: memref<1x8x128xf32, #tpu.memory_space<vmem>>, %arg4: memref<1x8x128xf32, #tpu.memory_space<vmem>>) attributes {dimension_semantics = [#tpu.dimension_semantics<parallel>], iteration_bounds = array<i64: 2>, scalar_prefetch = 0 : i64, scratch_operands = 0 : i64, tpu.core_type = #tpu.core_type<tc>, window_params = [{transform_indices = @transform_0, window_bounds = array<i64: 1, 4, 24, 128>}, {transform_indices = @transform_1, window_bounds = array<i64: 1, 4, 24, 128>}, {transform_indices = @transform_2, window_bounds = array<i64: 1, 8, 128>}, {transform_indices = @transform_3, window_bounds = array<i64: 1, 8, 128>}]} {
    %c0 = arith.constant 0 : index
    %c0_0 = arith.constant 0 : index
    %c0_1 = arith.constant 0 : index
    %c0_2 = arith.constant 0 : index
    %0 = vector.load %arg1[%c0, %c0_0, %c0_1, %c0_2] : memref<1x4x24x128xf32, #tpu.memory_space<vmem>>, vector<1x4x24x128xf32>
    %1 = vector.shape_cast %0 : vector<1x4x24x128xf32> to vector<4x24x128xf32>
    %cst = arith.constant 1.000000e-07 : f32
    %2 = vector.broadcast %cst : f32 to vector<4x24x128xf32>
    %3 = arith.maximumf %1, %2 : vector<4x24x128xf32>
    %4 = math.log %3 : vector<4x24x128xf32>
    %c0_3 = arith.constant 0 : index
    %c0_4 = arith.constant 0 : index
    %c0_5 = arith.constant 0 : index
    %c0_6 = arith.constant 0 : index
    %5 = vector.load %arg2[%c0_3, %c0_4, %c0_5, %c0_6] : memref<1x4x24x128xf32, #tpu.memory_space<vmem>>, vector<1x4x24x128xf32>
    %6 = vector.shape_cast %5 : vector<1x4x24x128xf32> to vector<4x24x128xf32>
    %cst_7 = arith.constant 1.000000e-07 : f32
    %7 = vector.broadcast %cst_7 : f32 to vector<4x24x128xf32>
    %8 = arith.maximumf %6, %7 : vector<4x24x128xf32>
    %9 = math.log %8 : vector<4x24x128xf32>
    %cst_8 = arith.constant dense<0.000000e+00> : vector<24x128xf32>
    %10 = vector.multi_reduction <add>, %4, %cst_8 [0] : vector<4x24x128xf32> to vector<24x128xf32>
    %cst_9 = arith.constant dense<0.000000e+00> : vector<24x128xf32>
    %11 = vector.multi_reduction <add>, %9, %cst_9 [0] : vector<4x24x128xf32> to vector<24x128xf32>
    %12 = arith.subf %10, %11 : vector<24x128xf32>
    %13 = vector.extract_strided_slice %12 {offsets = [0, 0], sizes = [16, 16], strides = [1, 1]} : vector<24x128xf32> to vector<16x16xf32>
    %14 = vector.extract_strided_slice %12 {offsets = [0, 1], sizes = [16, 16], strides = [1, 1]} : vector<24x128xf32> to vector<16x16xf32>
    %15 = vector.extract_strided_slice %12 {offsets = [0, 2], sizes = [16, 16], strides = [1, 1]} : vector<24x128xf32> to vector<16x16xf32>
    %16 = vector.extract_strided_slice %12 {offsets = [1, 0], sizes = [16, 16], strides = [1, 1]} : vector<24x128xf32> to vector<16x16xf32>
    %17 = vector.extract_strided_slice %12 {offsets = [1, 2], sizes = [16, 16], strides = [1, 1]} : vector<24x128xf32> to vector<16x16xf32>
    %18 = vector.extract_strided_slice %12 {offsets = [2, 0], sizes = [16, 16], strides = [1, 1]} : vector<24x128xf32> to vector<16x16xf32>
    %19 = vector.extract_strided_slice %12 {offsets = [2, 1], sizes = [16, 16], strides = [1, 1]} : vector<24x128xf32> to vector<16x16xf32>
    %20 = vector.extract_strided_slice %12 {offsets = [2, 2], sizes = [16, 16], strides = [1, 1]} : vector<24x128xf32> to vector<16x16xf32>
    %21 = arith.subf %13, %15 : vector<16x16xf32>
    %22 = arith.subf %16, %17 : vector<16x16xf32>
    %cst_10 = arith.constant 2.000000e+00 : f32
    %23 = vector.broadcast %cst_10 : f32 to vector<16x16xf32>
    %24 = arith.mulf %23, %22 : vector<16x16xf32>
    %25 = arith.addf %21, %24 : vector<16x16xf32>
    %26 = arith.subf %18, %20 : vector<16x16xf32>
    %27 = arith.addf %25, %26 : vector<16x16xf32>
    %cst_11 = arith.constant 1.250000e-01 : f32
    %28 = vector.broadcast %cst_11 : f32 to vector<16x16xf32>
    %29 = arith.mulf %27, %28 : vector<16x16xf32>
    %cst_12 = arith.constant 2.000000e+00 : f32
    %30 = vector.broadcast %cst_12 : f32 to vector<16x16xf32>
    %31 = arith.mulf %30, %14 : vector<16x16xf32>
    %32 = arith.addf %13, %31 : vector<16x16xf32>
    %33 = arith.addf %32, %15 : vector<16x16xf32>
    %cst_13 = arith.constant 2.000000e+00 : f32
    %34 = vector.broadcast %cst_13 : f32 to vector<16x16xf32>
    %35 = arith.mulf %34, %19 : vector<16x16xf32>
    %36 = arith.addf %18, %35 : vector<16x16xf32>
    %37 = arith.addf %36, %20 : vector<16x16xf32>
    %38 = arith.subf %33, %37 : vector<16x16xf32>
    %cst_14 = arith.constant 1.250000e-01 : f32
    %39 = vector.broadcast %cst_14 : f32 to vector<16x16xf32>
    %40 = arith.mulf %38, %39 : vector<16x16xf32>
    %41 = arith.mulf %29, %29 : vector<16x16xf32>
    %42 = arith.mulf %40, %40 : vector<16x16xf32>
    %43 = arith.addf %41, %42 : vector<16x16xf32>
    %44 = vector.extract_strided_slice %10 {offsets = [0, 0], sizes = [16, 16], strides = [1, 1]} : vector<24x128xf32> to vector<16x16xf32>
    %45 = vector.extract_strided_slice %10 {offsets = [0, 1], sizes = [16, 16], strides = [1, 1]} : vector<24x128xf32> to vector<16x16xf32>
    %46 = vector.extract_strided_slice %10 {offsets = [0, 2], sizes = [16, 16], strides = [1, 1]} : vector<24x128xf32> to vector<16x16xf32>
    %47 = vector.extract_strided_slice %10 {offsets = [1, 0], sizes = [16, 16], strides = [1, 1]} : vector<24x128xf32> to vector<16x16xf32>
    %48 = vector.extract_strided_slice %10 {offsets = [1, 2], sizes = [16, 16], strides = [1, 1]} : vector<24x128xf32> to vector<16x16xf32>
    %49 = vector.extract_strided_slice %10 {offsets = [2, 0], sizes = [16, 16], strides = [1, 1]} : vector<24x128xf32> to vector<16x16xf32>
    %50 = vector.extract_strided_slice %10 {offsets = [2, 1], sizes = [16, 16], strides = [1, 1]} : vector<24x128xf32> to vector<16x16xf32>
    %51 = vector.extract_strided_slice %10 {offsets = [2, 2], sizes = [16, 16], strides = [1, 1]} : vector<24x128xf32> to vector<16x16xf32>
    %52 = arith.subf %44, %46 : vector<16x16xf32>
    %53 = arith.subf %47, %48 : vector<16x16xf32>
    %cst_15 = arith.constant 2.000000e+00 : f32
    %54 = vector.broadcast %cst_15 : f32 to vector<16x16xf32>
    %55 = arith.mulf %54, %53 : vector<16x16xf32>
    %56 = arith.addf %52, %55 : vector<16x16xf32>
    %57 = arith.subf %49, %51 : vector<16x16xf32>
    %58 = arith.addf %56, %57 : vector<16x16xf32>
    %cst_16 = arith.constant 1.250000e-01 : f32
    %59 = vector.broadcast %cst_16 : f32 to vector<16x16xf32>
    %60 = arith.mulf %58, %59 : vector<16x16xf32>
    %cst_17 = arith.constant 2.000000e+00 : f32
    %61 = vector.broadcast %cst_17 : f32 to vector<16x16xf32>
    %62 = arith.mulf %61, %45 : vector<16x16xf32>
    %63 = arith.addf %44, %62 : vector<16x16xf32>
    %64 = arith.addf %63, %46 : vector<16x16xf32>
    %cst_18 = arith.constant 2.000000e+00 : f32
    %65 = vector.broadcast %cst_18 : f32 to vector<16x16xf32>
    %66 = arith.mulf %65, %50 : vector<16x16xf32>
    %67 = arith.addf %49, %66 : vector<16x16xf32>
    %68 = arith.addf %67, %51 : vector<16x16xf32>
    %69 = arith.subf %64, %68 : vector<16x16xf32>
    %cst_19 = arith.constant 1.250000e-01 : f32
    %70 = vector.broadcast %cst_19 : f32 to vector<16x16xf32>
    %71 = arith.mulf %69, %70 : vector<16x16xf32>
    %72 = arith.mulf %60, %60 : vector<16x16xf32>
    %73 = arith.mulf %71, %71 : vector<16x16xf32>
    %74 = arith.addf %72, %73 : vector<16x16xf32>
    %75 = vector.extract_strided_slice %11 {offsets = [0, 0], sizes = [16, 16], strides = [1, 1]} : vector<24x128xf32> to vector<16x16xf32>
    %76 = vector.extract_strided_slice %11 {offsets = [0, 1], sizes = [16, 16], strides = [1, 1]} : vector<24x128xf32> to vector<16x16xf32>
    %77 = vector.extract_strided_slice %11 {offsets = [0, 2], sizes = [16, 16], strides = [1, 1]} : vector<24x128xf32> to vector<16x16xf32>
    %78 = vector.extract_strided_slice %11 {offsets = [1, 0], sizes = [16, 16], strides = [1, 1]} : vector<24x128xf32> to vector<16x16xf32>
    %79 = vector.extract_strided_slice %11 {offsets = [1, 2], sizes = [16, 16], strides = [1, 1]} : vector<24x128xf32> to vector<16x16xf32>
    %80 = vector.extract_strided_slice %11 {offsets = [2, 0], sizes = [16, 16], strides = [1, 1]} : vector<24x128xf32> to vector<16x16xf32>
    %81 = vector.extract_strided_slice %11 {offsets = [2, 1], sizes = [16, 16], strides = [1, 1]} : vector<24x128xf32> to vector<16x16xf32>
    %82 = vector.extract_strided_slice %11 {offsets = [2, 2], sizes = [16, 16], strides = [1, 1]} : vector<24x128xf32> to vector<16x16xf32>
    %83 = arith.subf %75, %77 : vector<16x16xf32>
    %84 = arith.subf %78, %79 : vector<16x16xf32>
    %cst_20 = arith.constant 2.000000e+00 : f32
    %85 = vector.broadcast %cst_20 : f32 to vector<16x16xf32>
    %86 = arith.mulf %85, %84 : vector<16x16xf32>
    %87 = arith.addf %83, %86 : vector<16x16xf32>
    %88 = arith.subf %80, %82 : vector<16x16xf32>
    %89 = arith.addf %87, %88 : vector<16x16xf32>
    %cst_21 = arith.constant 1.250000e-01 : f32
    %90 = vector.broadcast %cst_21 : f32 to vector<16x16xf32>
    %91 = arith.mulf %89, %90 : vector<16x16xf32>
    %cst_22 = arith.constant 2.000000e+00 : f32
    %92 = vector.broadcast %cst_22 : f32 to vector<16x16xf32>
    %93 = arith.mulf %92, %76 : vector<16x16xf32>
    %94 = arith.addf %75, %93 : vector<16x16xf32>
    %95 = arith.addf %94, %77 : vector<16x16xf32>
    %cst_23 = arith.constant 2.000000e+00 : f32
    %96 = vector.broadcast %cst_23 : f32 to vector<16x16xf32>
    %97 = arith.mulf %96, %81 : vector<16x16xf32>
    %98 = arith.addf %80, %97 : vector<16x16xf32>
    %99 = arith.addf %98, %82 : vector<16x16xf32>
    %100 = arith.subf %95, %99 : vector<16x16xf32>
    %cst_24 = arith.constant 1.250000e-01 : f32
    %101 = vector.broadcast %cst_24 : f32 to vector<16x16xf32>
    %102 = arith.mulf %100, %101 : vector<16x16xf32>
    %103 = arith.mulf %91, %91 : vector<16x16xf32>
    %104 = arith.mulf %102, %102 : vector<16x16xf32>
    %105 = arith.addf %103, %104 : vector<16x16xf32>
    %106 = arith.subf %74, %105 : vector<16x16xf32>
    %107 = math.absf %106 : vector<16x16xf32>
    %cst_25 = arith.constant 0.111111112 : f32
    %108 = vector.broadcast %cst_25 : f32 to vector<16x16xf32>
    %109 = arith.cmpf olt, %107, %108 : vector<16x16xf32>
    %cst_26 = arith.constant 3.000000e+00 : f32
    %110 = vector.broadcast %cst_26 : f32 to vector<16x16xf32>
    %111 = arith.mulf %110, %107 : vector<16x16xf32>
    %cst_27 = arith.constant 5.000000e-01 : f32
    %112 = vector.broadcast %cst_27 : f32 to vector<16x16xf32>
    %113 = arith.mulf %112, %111 : vector<16x16xf32>
    %cst_28 = arith.constant 3.000000e+00 : f32
    %114 = vector.broadcast %cst_28 : f32 to vector<16x16xf32>
    %115 = arith.mulf %114, %107 : vector<16x16xf32>
    %116 = arith.mulf %113, %115 : vector<16x16xf32>
    %cst_29 = arith.constant 5.000000e-01 : f32
    %cst_30 = arith.constant 0.111111112 : f32
    %117 = arith.mulf %cst_29, %cst_30 : f32
    %118 = vector.broadcast %117 : f32 to vector<16x16xf32>
    %119 = arith.subf %107, %118 : vector<16x16xf32>
    %120 = arith.select %109, %116, %119 : vector<16x16xi1>, vector<16x16xf32>
    %cst_31 = arith.constant dense<0.000000e+00> : vector<16xf32>
    %121 = vector.multi_reduction <add>, %43, %cst_31 [1] : vector<16x16xf32> to vector<16xf32>
    %122 = vector.shape_cast %121 : vector<16xf32> to vector<16x1xf32>
    %cst_32 = arith.constant dense<0.000000e+00> : vector<1xf32>
    %123 = vector.multi_reduction <add>, %122, %cst_32 [0] : vector<16x1xf32> to vector<1xf32>
    %124 = vector.shape_cast %123 : vector<1xf32> to vector<1x1xf32>
    %125 = vector.shape_cast %124 : vector<1x1xf32> to vector<1x1x1xf32>
    %126 = vector.broadcast %125 : vector<1x1x1xf32> to vector<1x8x128xf32>
    %c0_33 = arith.constant 0 : index
    %c0_34 = arith.constant 0 : index
    %c0_35 = arith.constant 0 : index
    %127 = vector.load %arg3[%c0_33, %c0_34, %c0_35] : memref<1x8x128xf32, #tpu.memory_space<vmem>>, vector<1x8x128xf32>
    tpu.vector_store %arg3[%c0_33, %c0_34, %c0_35], %126 {strides = array<i32>} : memref<1x8x128xf32, #tpu.memory_space<vmem>>, vector<1x8x128xf32>,
    %cst_36 = arith.constant dense<0.000000e+00> : vector<16xf32>
    %128 = vector.multi_reduction <add>, %120, %cst_36 [1] : vector<16x16xf32> to vector<16xf32>
    %129 = vector.shape_cast %128 : vector<16xf32> to vector<16x1xf32>
    %cst_37 = arith.constant dense<0.000000e+00> : vector<1xf32>
    %130 = vector.multi_reduction <add>, %129, %cst_37 [0] : vector<16x1xf32> to vector<1xf32>
    %131 = vector.shape_cast %130 : vector<1xf32> to vector<1x1xf32>
    %132 = vector.shape_cast %131 : vector<1x1xf32> to vector<1x1x1xf32>
    %133 = vector.broadcast %132 : vector<1x1x1xf32> to vector<1x8x128xf32>
    %c0_38 = arith.constant 0 : index
    %c0_39 = arith.constant 0 : index
    %c0_40 = arith.constant 0 : index
    %134 = vector.load %arg4[%c0_38, %c0_39, %c0_40] : memref<1x8x128xf32, #tpu.memory_space<vmem>>, vector<1x8x128xf32>
    tpu.vector_store %arg4[%c0_38, %c0_39, %c0_40], %133 {strides = array<i32>} : memref<1x8x128xf32, #tpu.memory_space<vmem>>, vector<1x8x128xf32>,
    return
  }
  func.func @transform_0(%arg0: i32) -> (i32, i32, i32, i32) {
    %c0_i32 = arith.constant 0 : i32
    %c0_i32_0 = arith.constant 0 : i32
    %c0_i32_1 = arith.constant 0 : i32
    %c0_i32_2 = arith.constant 0 : i32
    return %arg0, %c0_i32, %c0_i32_0, %c0_i32_1 : i32, i32, i32, i32
  }
  func.func @transform_1(%arg0: i32) -> (i32, i32, i32, i32) {
    %c0_i32 = arith.constant 0 : i32
    %c0_i32_0 = arith.constant 0 : i32
    %c0_i32_1 = arith.constant 0 : i32
    %c0_i32_2 = arith.constant 0 : i32
    return %arg0, %c0_i32, %c0_i32_0, %c0_i32_1 : i32, i32, i32, i32
  }
  func.func @transform_2(%arg0: i32) -> (i32, i32, i32) {
    %c0_i32 = arith.constant 0 : i32
    %c0_i32_0 = arith.constant 0 : i32
    %c0_i32_1 = arith.constant 0 : i32
    return %arg0, %c0_i32, %c0_i32_0 : i32, i32, i32
  }
  func.func @transform_3(%arg0: i32) -> (i32, i32, i32) {
    %c0_i32 = arith.constant 0 : i32
    %c0_i32_0 = arith.constant 0 : i32
    %c0_i32_1 = arith.constant 0 : i32
    return %arg0, %c0_i32, %c0_i32_0 : i32, i32, i32
  }
}

</mosaic_0001>

<bundles_post_ra>
// kernel: tpu_custom_call.1
= control target key start
LH: loop header
LB: loop body
LE: loop exit
PB: predicated region body
PF: predicated region fallthrough
CT: control target
= control target key end

     0   :  { %9 = vsyncpa [#allocation3], 0  ;;  %s1518_s0 = inlined_call_operand.hbm [shape: f32[2,4,24,128], index: 0, kind: input, shape index: {}]   ;;  %s1519_s1 = inlined_call_operand.hbm [shape: f32[2,4,24,128], index: 1, kind: input, shape index: {}]   ;;  %s1520_s2 = inlined_call_operand.hbm [shape: f32[2,8,128], index: 2, kind: output, shape index: {0}]   ;;  %s1521_s3 = inlined_call_operand.hbm [shape: f32[2,8,128], index: 3, kind: output, shape index: {1}]  }
   0x1   :  { %11 = vsyncpa [#allocation3 + $0x1], 0 }
   0x2   :  { %12 = vsyncpa [#allocation6], 0 }
   0x3   :  { %14 = vsyncpa [#allocation6 + $0x1], 0 }
   0x4   :  { %15 = vsyncpa [#allocation4], 0 }
   0x5   :  { %17 = vsyncpa [#allocation4 + $0x1], 0 }
   0x6   :  { %18 = vsyncpa [#allocation9], 0 }
   0x7   :  { %20 = vsyncpa [#allocation9 + $0x1], 0  ;;  %s1137_s12 = smov 0   ;;  %s1139_s13 = smov 0  }
   0x8   :  { %s1141_s14 = smov 0   ;;  %s1143_s15 = smov 0  }
   0x9 LB: > { %s1158_s16 = sadd.s32 4294967295, %s1107_s15   ;;  %s816_s17 = sadd.s32 4294967294, %s1107_s15   ;;  %s1107_s15 = sphi %s1143_s15, %s1536_s15   ;;  %s1103_s14 = sphi %s1141_s14, %s1535_s14   ;;  %s1099_s13 = sphi %s1139_s13, %s1534_s13   ;;  %s1095_s12 = sphi %s1137_s12, %s1533_s12  }
   0xa   : > { %s1162_s18 = sadd.s32 1, %s1107_s15   ;;  %s33_s19 = sadd.s32 1, %s1103_s14 }
   0xb   : > { %s30_s20 = ssub.s32 %s1107_s15, %s1162_s18  ;;  %p40_p0 = scmp.ne.s32.totalorder %s1103_s14, %s1099_s13 }
   0xc   : > { %p31_p1 = scmp.eq.s32.totalorder %s30_s20, 0  ;;  %p41_p2 = scmp.eq.s32.totalorder %s1107_s15, 0 }
   0xd   : > { %p46_p3 = scmp.ne.s32.totalorder %s1099_s13, %s1095_s12  ;;  %p47_p4 = scmp.eq.s32.totalorder %s1158_s16, 0 }
   0xe   : > { %s1174_s21 = scalar_select %p31_p1, %s1103_s14, %s33_s19  }
   0xf   : > { %p42_p5 = por %p41_p2, %p40_p0  ;;  %p1176_p6 = por %p47_p4, %p46_p3 }
  0x10   : > { %p96_p7 = scmp.eq.s32.totalorder %s1158_s16, 1  ;;  %p102_p8 = scmp.eq.s32.totalorder %s816_s17, 1 }
  0x11   : > { %s1524_s22 = scalar_select %p1176_p6, 1, 0 }
  0x12   : > { %p859_p10 = scmp.lt.s32.totalorder %s1107_s15, 2  ;;  %p1183_p11 = por %p96_p7, %p40_p0 }
  0x13   : > { %p1187_p12 = por %p102_p8, %p46_p3  ;;  %s1192_s25 = sand.u32 1, %s1103_s14  }
  0x14   : > { %s1525_s23 = scalar_select %p1183_p11, 1, 0 }
  0x15   : > { %s1526_s24 = scalar_select %p1187_p12, 1, 0 }
  0x16   : > { %s833_s26 = smul.u32 1536, %s1107_s15  ;;  %p1203_p13 = pnand %p859_p10, %p42_p5 }
  0x17   : > { %s832_s27 = smul.u32 96, %s1192_s25  ;;  %s149_s7 = scalar_lea.sflag [#allocation3], %s1192_s25 }
  0x18   : > { %s1201_s30 = scalar_lea.hbm %s1518_s0, %s833_s26  ;;  %p947_p1 = pneg %p1203_p13 }
  0x19   : > { %s152_s5 = scalar_lea.vmem [#allocation2], %s832_s27  ;;  %s945_s8 = scalar_lea.hbm %s1201_s30, 1536 }
  0x1a   : > { %s159_s6 = sshll.u32 %s152_s5, 4  ;;  %p946_p0 = scmp.ne.s32.totalorder %s1201_s30, %s945_s8  ;;  %s1209_s6 = int_to_ptr.vmem [resolvable:$true] %s159_s6 }
  0x1b   : > { %s950_s11 = scalar_lea.hbm %s1518_s0, 3072  ;;  %p951_p4 = scmp.lt.u32.totalorder %s1201_s30, %s1518_s0 }
  0x1c   : > { %p948_p2 = pnand %p947_p1, %p946_p0  ;;  %p952_p5 = scmp.lt.u32.totalorder %s950_s11, %s945_s8 }
  0x1d   : > { %p954_p8 = scmp.lt.u32.totalorder %s945_s8, %s1201_s30 }
  0x1e   : > { %p949_p3 = pneg %p948_p2  ;;  %p953_p7 = por %p952_p5, %p951_p4 }
  0x20   : > { %p955_p10 = por %p954_p8, %p953_p7 }
  0x22   : > { %p956_p9 = pnand %p955_p10, %p949_p3 }
  0x24   : > { %959 = shalt.err (!%p956_p9)
}
  0x25   : > { %s960_s20 = scalar_lea.vmem %s1209_s6, 1536  ;;  %s1109_s28 = smov [#allocation2]  }
  0x26   : > { %p961_p0 = scmp.ne.s32.totalorder %s1209_s6, %s960_s20  ;;  %s965_s29 = sshll.u32 %s1109_s28, 4  ;;  %s966_s29 = int_to_ptr.vmem [resolvable:$false] %s965_s29 }
  0x27   : > { %s967_s5 = scalar_lea.vmem %s966_s29, 3072  ;;  %p968_p11 = scmp.lt.s32.totalorder %s1209_s6, %s966_s29 }
  0x28   : > { %p963_p2 = pnand %p961_p0, %p947_p1  ;;  %p969_p4 = scmp.lt.s32.totalorder %s967_s5, %s960_s20 }
  0x2a   : > { %p964_p12 = pneg %p963_p2  ;;  %p970_p5 = por %p969_p4, %p968_p11 }
  0x2c   : > { %p971_p7 = pnand %p970_p5, %p964_p12 }
  0x2e   : > { %974 = shalt.err (!%p971_p7)
}
  0x2f   : > { %s1110_s8 = smov 128   ;;  %s1111_s9 = smov 8  }
  0x30   : > { %848 = dma.hbm_to_vmem [thread:$0]  (!%p1203_p13), %s1201_s30, 1536, %s1209_s6, %s149_s7, %s1110_s8, %s1110_s8, %s1111_s9  }
  0x31   : > { %p821_p9 = scmp.ge.s32.totalorder %s1107_s15, 1  ;;  %p188_p11 = scmp.lt.s32.totalorder %s1107_s15, 3 }
  0x32   : > { %s1253_s19 = scalar_lea.hbm %s1519_s1, %s833_s26  ;;  %s173_s20 = scalar_lea.vmem [#allocation5], %s832_s27 }
  0x33   : > { %p1244_p12 = pnand %p821_p9, %p188_p11  ;;  %s180_s28 = sshll.u32 %s173_s20, 4  ;;  %s1257_s28 = int_to_ptr.vmem [resolvable:$true] %s180_s28 }
  0x34   : > { %s170_s30 = scalar_lea.sflag [#allocation6], %s1192_s25  ;;  %s975_s6 = scalar_lea.hbm %s1253_s19, 1536 }
  0x35   : > { %p976_p3 = scmp.ne.s32.totalorder %s1253_s19, %s975_s6  ;;  %s980_s26 = scalar_lea.hbm %s1519_s1, 3072 }
  0x36   : > { %p981_p0 = scmp.lt.u32.totalorder %s1253_s19, %s1519_s1  ;;  %p982_p2 = scmp.lt.u32.totalorder %s980_s26, %s975_s6 }
  0x37   : > { %p978_p8 = pnand %p976_p3, %p947_p1  ;;  %p984_p5 = scmp.lt.u32.totalorder %s975_s6, %s1253_s19 }
  0x38   : > { %p983_p4 = por %p982_p2, %p981_p0 }
  0x39   : > { %p979_p10 = pneg %p978_p8 }
  0x3a   : > { %p985_p7 = por %p984_p5, %p983_p4 }
  0x3c   : > { %p986_p9 = pnand %p985_p7, %p979_p10 }
  0x3e   : > { %989 = shalt.err (!%p986_p9)
}
  0x3f   : > { %s990_s27 = scalar_lea.vmem %s1257_s28, 1536  ;;  %s1112_s17 = smov [#allocation5]  }
  0x40   : > { %p991_p11 = scmp.ne.s32.totalorder %s1257_s28, %s990_s27  ;;  %s995_s20 = sshll.u32 %s1112_s17, 4  ;;  %s996_s20 = int_to_ptr.vmem [resolvable:$false] %s995_s20 }
  0x41   : > { %s997_s7 = scalar_lea.vmem %s996_s20, 3072  ;;  %p998_p6 = scmp.lt.s32.totalorder %s1257_s28, %s996_s20 }
  0x42   : > { %p993_p3 = pnand %p991_p11, %p947_p1  ;;  %p999_p0 = scmp.lt.s32.totalorder %s997_s7, %s990_s27 }
  0x44   : > { %p994_p8 = pneg %p993_p3  ;;  %p1000_p2 = por %p999_p0, %p998_p6 }
  0x46   : > { %p1001_p4 = pnand %p1000_p2, %p994_p8 }
  0x48   : > { %1004 = shalt.err (!%p1001_p4)
}
  0x49   : > { %851 = dma.hbm_to_vmem [thread:$0]  (!%p1203_p13), %s1253_s19, 1536, %s1257_s28, %s170_s30, %s1110_s8, %s1110_s8, %s1111_s9  }
  0x4a   : > { %192 = sbr.rel (%p1244_p12) target bundleno = 476 (0x1dc), region = 28  ;;  %s1291_s6 = sand.u32 (!%p1244_p12), 1, %s1099_s13  }
  0x4b   : > { %s836_s29 = smul.u32 (!%p1244_p12), 96, %s1291_s6  ;;  %s195_s26 = scalar_lea.sflag (!%p1244_p12), [#allocation3], %s1291_s6 }
  0x4c   : > { %p1529_p6 = scmp.ne.s32.totalorder (!%p1244_p12), %s1524_s22, 0 }
  0x4d   : > { %s1295_s4 = scalar_lea.vmem (!%p1244_p12), [#allocation2], %s836_s29 }
  0x51   : > { %1078 = dma.done.wait (%p1529_p6), %s195_s26, 1536  }
  0x52   : > { %1080 = vsyncadd (%p1529_p6), %s195_s26, 4294965760  ;;  %s204_s25 = scalar_lea.sflag [#allocation6], %s1291_s6  ;;  %s1302_s8 = scalar_lea.vmem [#allocation5], %s836_s29 }
  0x53   : > { %1082 = dma.done.wait (%p1529_p6), %s204_s25, 1536  }
  0x54   : > { %1084 = vsyncadd (%p1529_p6), %s204_s25, 4294965760  ;;  %v242_v0 = vld [vmem:[%s1295_s4 + $0x10] sm:$0xff]  ;;  %v245_v1 = vld [vmem:[%s1295_s4 + $0x28] sm:$0xff]  ;;  %s1113_s22 = smov 126   ;;  %s1114_s9 = smov 127   ;;  %vm378_vm0 = vcmask 1046528  }
  0x55   : > { %v248_v2 = vld [vmem:[%s1295_s4 + $0x40] sm:$0xff]  ;;  %v251_v3 = vld [vmem:[%s1295_s4 + $0x58] sm:$0xff]  ;;  %v254_v4 = vmax.f32 %v242_v0, 1e-07  ;;  %v257_v5 = vmax.f32 %v245_v1, 1e-07 }
  0x56   : > { %v240_v6 = vld [vmem:[%s1295_s4] sm:$0xff]  ;;  %v260_v7 = vmax.f32 %v248_v2, 1e-07  ;;  %v263_v8 = vmax.f32 %v251_v3, 1e-07  ;;  %v243_v9 = vld [vmem:[%s1295_s4 + $0x18] sm:$0xff] }
  0x57   : > { %v246_v10 = vld [vmem:[%s1295_s4 + $0x30] sm:$0xff]  ;;  %897 = vlog2.f32 %v254_v4  ;;  %v249_v11 = vld [vmem:[%s1295_s4 + $0x48] sm:$0xff]  ;;  %v252_v12 = vmax.f32 %v240_v6, 1e-07  ;;  %v255_v13 = vmax.f32 %v243_v9, 1e-07 }
  0x58   : > { %899 = vlog2.f32 %v257_v5  ;;  %v288_v14 = vld [vmem:[%s1302_s8] sm:$0xff]  ;;  %v258_v15 = vmax.f32 %v246_v10, 1e-07  ;;  %v291_v16 = vld [vmem:[%s1302_s8 + $0x18] sm:$0xff]  ;;  %v261_v17 = vmax.f32 %v249_v11, 1e-07 }
  0x59   : > { %901 = vlog2.f32 %v260_v7  ;;  %v294_v18 = vld [vmem:[%s1302_s8 + $0x30] sm:$0xff]  ;;  %v297_v19 = vld [vmem:[%s1302_s8 + $0x48] sm:$0xff]  ;;  %v300_v20 = vmax.f32 %v288_v14, 1e-07  ;;  %v303_v21 = vmax.f32 %v291_v16, 1e-07 }
  0x5a   : > { %903 = vlog2.f32 %v263_v8  ;;  %v241_v22 = vld [vmem:[%s1295_s4 + $0x8] sm:$0xff]  ;;  %v306_v23 = vmax.f32 %v294_v18, 1e-07  ;;  %v244_v24 = vld [vmem:[%s1295_s4 + $0x20] sm:$0xff]  ;;  %v309_v25 = vmax.f32 %v297_v19, 1e-07 }
  0x5b   : > { %905 = vlog2.f32 %v252_v12  ;;  %v247_v26 = vld [vmem:[%s1295_s4 + $0x38] sm:$0xff]  ;;  %v250_v27 = vld [vmem:[%s1295_s4 + $0x50] sm:$0xff]  ;;  %v253_v28 = vmax.f32 %v241_v22, 1e-07  ;;  %v256_v29 = vmax.f32 %v244_v24, 1e-07 }
  0x5c   : > { %907 = vlog2.f32 %v255_v13  ;;  %v290_v30 = vld [vmem:[%s1302_s8 + $0x10] sm:$0xff]  ;;  %v259_v32 = vmax.f32 %v247_v26, 1e-07  ;;  %v293_v33 = vld [vmem:[%s1302_s8 + $0x28] sm:$0xff]  ;;  %v262_v36 = vmax.f32 %v250_v27, 1e-07 }
  0x5d   : > { %909 = vlog2.f32 %v258_v15  ;;  %v296_v37 = vld [vmem:[%s1302_s8 + $0x40] sm:$0xff]  ;;  %v299_v40 = vld [vmem:[%s1302_s8 + $0x58] sm:$0xff]  ;;  %v302_v41 = vmax.f32 %v290_v30, 1e-07  ;;  %v305_v44 = vmax.f32 %v293_v33, 1e-07 }
  0x5e   : > { %911 = vlog2.f32 %v261_v17  ;;  %v289_v45 = vld [vmem:[%s1302_s8 + $0x8] sm:$0xff]  ;;  %v308_v49 = vmax.f32 %v296_v37, 1e-07  ;;  %v292_v50 = vld [vmem:[%s1302_s8 + $0x20] sm:$0xff]  ;;  %v295_v51 = vld [vmem:[%s1302_s8 + $0x38] sm:$0xff]  ;;  %vm391_vm1 = vcmask 1045504  }
  0x5f   : > { %913 = vlog2.f32 %v300_v20  ;;  %v311_v54 = vmax.f32 %v299_v40, 1e-07  ;;  %v298_v58 = vld [vmem:[%s1302_s8 + $0x50] sm:$0xff]  ;;  %v301_v59 = vmax.f32 %v289_v45, 1e-07  ;;  %vm630_vm2 = vcmask 130048  }
  0x60   : > { %915 = vlog2.f32 %v303_v21  ;;  %v304_v62 = vmax.f32 %v292_v50, 1e-07  ;;  %v307_v63 = vmax.f32 %v295_v51, 1e-07  ;;  %v310_v6 = vmax.f32 %v298_v58, 1e-07 }
  0x61   : > { %v898_v31 = vpop.eup %897  ;;  %917 = vlog2.f32 %v306_v23  ;;  %s822_s10 = sshll.u32 %s1291_s6, 3  ;;  %s828_s19 = sshll.u32 %s1158_s16, 7 }
  0x62   : > { %v900_v34 = vpop.eup %899  ;;  %v269_v35 = vmul.f32 0.6931472, %v898_v31  ;;  %919 = vlog2.f32 %v309_v25  ;;  %s232_s28 = scalar_lea.vmem [#allocation7], %s822_s10  ;;  %s1441_s27 = scalar_lea.hbm %s1520_s2, %s828_s19 }
  0x63   : > { %v902_v38 = vpop.eup %901  ;;  %v275_v39 = vmul.f32 0.6931472, %v900_v34  ;;  %921 = vlog2.f32 %v253_v28  ;;  %s678_s30 = sshll.u32 %s232_s28, 4  ;;  %s660_s17 = scalar_lea.sflag [#allocation4], %s1291_s6  ;;  %s1443_s30 = int_to_ptr.vmem [resolvable:$true] %s678_s30 }
  0x64   : > { %v904_v42 = vpop.eup %903  ;;  %v281_v43 = vmul.f32 0.6931472, %v902_v38  ;;  %923 = vlog2.f32 %v256_v29  ;;  %s1005_s20 = scalar_lea.vmem %s1443_s30, 128  ;;  %p1530_p1 = scmp.ne.s32.totalorder %s1525_s23, 0 }
  0x65   : > { %v906_v46 = vpop.eup %905  ;;  %v287_v47 = vmul.f32 0.6931472, %v904_v42  ;;  %v342_v48 = vadd.f32 %v275_v39, %v269_v35  ;;  %925 = vlog2.f32 %v259_v32  ;;  %p1006_p13 = scmp.ne.s32.totalorder %s1443_s30, %s1005_s20  ;;  %s1115_s7 = smov [#allocation7]  }
  0x66   : > { %v908_v52 = vpop.eup %907  ;;  %v265_v53 = vmul.f32 0.6931472, %v906_v46  ;;  %927 = vlog2.f32 %v262_v36  ;;  %s1009_s29 = sshll.u32 %s1115_s7, 4  ;;  %s1010_s29 = int_to_ptr.vmem [resolvable:$false] %s1009_s29 }
  0x67   : > { %v910_v55 = vpop.eup %909  ;;  %v343_v56 = vadd.f32 %v342_v48, %v281_v43  ;;  %v271_v57 = vmul.f32 0.6931472, %v908_v52  ;;  %929 = vlog2.f32 %v302_v41  ;;  %p1007_p12 = pnand %p1006_p13, %p1530_p1  ;;  %s1011_s26 = scalar_lea.vmem %s1010_s29, 256 }
  0x68   : > { %v912_v60 = vpop.eup %911  ;;  %v277_v61 = vmul.f32 0.6931472, %v910_v55  ;;  %931 = vlog2.f32 %v305_v44  ;;  %p1012_p5 = scmp.lt.s32.totalorder %s1443_s30, %s1010_s29  ;;  %p1013_p7 = scmp.lt.s32.totalorder %s1011_s26, %s1005_s20 }
  0x69   : > { %v914_v0 = vpop.eup %913  ;;  %v1332_v1 = vadd.f32 %v343_v56, %v287_v47  ;;  %v283_v2 = vmul.f32 0.6931472, %v912_v60  ;;  %v336_v3 = vadd.f32 %v271_v57, %v265_v53  ;;  %933 = vlog2.f32 %v308_v49  ;;  %p1008_p10 = pneg %p1007_p12 }
  0x6a   : > { %v916_v4 = vpop.eup %915  ;;  %v313_v5 = vmul.f32 0.6931472, %v914_v0  ;;  %935 = vlog2.f32 %v311_v54  ;;  %p1014_p9 = por %p1013_p7, %p1012_p5 }
  0x6b   : > { %v918_v7 = vpop.eup %917  ;;  %455 = vrot.lane.b32.xlu1 %v1332_v1, %s1113_s22  ;;  %v337_v8 = vadd.f32 %v336_v3, %v277_v61  ;;  %v319_v9 = vmul.f32 0.6931472, %v916_v4  ;;  %937 = vlog2.f32 %v301_v59  ;;  %v502_v53 = vmul.f32 2.0, %v1332_v1 }
  0x6c   : > { %v920_v10 = vpop.eup %919  ;;  %v325_v11 = vmul.f32 0.6931472, %v918_v7  ;;  %939 = vlog2.f32 %v304_v62  ;;  %p1015_p11 = pnand %p1014_p9, %p1008_p10 }
  0x6d   : > { %v922_v12 = vpop.eup %921  ;;  %v1336_v13 = vadd.f32 %v337_v8, %v283_v2  ;;  %v331_v14 = vmul.f32 0.6931472, %v920_v10  ;;  %v345_v15 = vadd.f32 %v319_v9, %v313_v5  ;;  %941 = vlog2.f32 %v307_v63 }
  0x6e   : > { %v924_v16 = vpop.eup %923  ;;  %v267_v17 = vmul.f32 0.6931472, %v922_v12  ;;  %943 = vlog2.f32 %v310_v6 }
  0x6f   : > { %v926_v18 = vpop.eup %925  ;;  %446 = vrot.lane.b32.xlu0 %v1336_v13, %s1113_s22  ;;  %v346_v19 = vadd.f32 %v345_v15, %v325_v11  ;;  %v273_v20 = vmul.f32 0.6931472, %v924_v16  ;;  %v488_v51 = vmul.f32 2.0, %v1336_v13 }
  0x70   : > { %v928_v21 = vpop.eup %927  ;;  %v279_v22 = vmul.f32 0.6931472, %v926_v18 }
  0x71   : > { %v930_v23 = vpop.eup %929  ;;  %v1340_v24 = vadd.f32 %v346_v19, %v331_v14  ;;  %v285_v25 = vmul.f32 0.6931472, %v928_v21  ;;  %v339_v26 = vadd.f32 %v273_v20, %v267_v17 }
  0x72   : > { %v932_v27 = vpop.eup %931  ;;  %v317_v28 = vmul.f32 0.6931472, %v930_v23 }
  0x73   : > { %v934_v29 = vpop.eup %933  ;;  %531 = vrot.lane.b32.xlu1 %v1340_v24, %s1113_s22  ;;  %v340_v30 = vadd.f32 %v339_v26, %v279_v22  ;;  %v323_v31 = vmul.f32 0.6931472, %v932_v27  ;;  %v573_v52 = vmul.f32 2.0, %v1340_v24  ;;  %v1368_v57 = vsub.f32 %v1336_v13, %v1340_v24 }
  0x74   : > { %v936_v32 = vpop.eup %935  ;;  %v329_v33 = vmul.f32 0.6931472, %v934_v29 }
  0x75   : > { %v938_v34 = vpop.eup %937  ;;  %v1344_v35 = vadd.f32 %v340_v30, %v285_v25  ;;  %v335_v36 = vmul.f32 0.6931472, %v936_v32  ;;  %v351_v37 = vadd.f32 %v323_v31, %v317_v28  ;;  %v403_v58 = vmul.f32 2.0, %v1368_v57 }
  0x76   : > { %v940_v38 = vpop.eup %939  ;;  %v315_v39 = vmul.f32 0.6931472, %v938_v34 }
  0x77   : > { %v942_v40 = vpop.eup %941  ;;  %448 = vrot.lane.b32.xlu0 %v1344_v35, %s1113_s22  ;;  %v352_v41 = vadd.f32 %v351_v37, %v329_v33  ;;  %v321_v42 = vmul.f32 0.6931472, %v940_v38  ;;  %v489_v49 = vmul.f32 2.0, %v1344_v35 }
  0x78   : > { %v944_v43 = vpop.eup %943  ;;  %v327_v44 = vmul.f32 0.6931472, %v942_v40 }
  0x79   : > { %v1348_v45 = vadd.f32 %v352_v41, %v335_v36  ;;  %v333_v46 = vmul.f32 0.6931472, %v944_v43  ;;  %v348_v47 = vadd.f32 %v321_v42, %v315_v39 }
  0x7b   : > { %540 = vrot.lane.b32.xlu1 %v1348_v45, %s1113_s22  ;;  %v349_v48 = vadd.f32 %v348_v47, %v327_v44  ;;  %v587_v54 = vmul.f32 2.0, %v1348_v45  ;;  %v1375_v59 = vsub.f32 %v1332_v1, %v1348_v45 }
  0x7d   : > { %v1353_v50 = vadd.f32 %v349_v48, %v333_v46  ;;  %v417_v60 = vmul.f32 2.0, %v1375_v59 }
  0x7f   : > { %533 = vrot.lane.b32.xlu0 %v1353_v50, %s1113_s22  ;;  %494 = vrot.lane.b32.xlu1 %v489_v49, %s1114_s9  ;;  %v574_v55 = vmul.f32 2.0, %v1353_v50  ;;  %v1364_v56 = vsub.f32 %v1344_v35, %v1353_v50 }
  0x81   : > { %v404_v61 = vmul.f32 2.0, %v1364_v56 }
  0x83   : > { %492 = vrot.lane.b32.xlu0 %v488_v51, %s1114_s9  ;;  %577 = vrot.lane.b32.xlu1 %v573_v52, %s1114_s9 }
  0x87   : > { %504 = vrot.lane.b32.xlu0 %v502_v53, %s1114_s9  ;;  %589 = vrot.lane.b32.xlu1 %v587_v54, %s1114_s9 }
  0x8b   : > { %579 = vrot.lane.b32.xlu0 %v574_v55, %s1114_s9  ;;  %361 = vrot.lane.b32.xlu1 %v1364_v56, %s1113_s22 }
  0x8f   : > { %359 = vrot.lane.b32.xlu0 %v1368_v57, %s1113_s22  ;;  %407 = vrot.lane.b32.xlu1 %v403_v58, %s1114_s9 }
  0x93   : > { %368 = vrot.lane.b32.xlu0 %v1375_v59, %s1113_s22  ;;  %419 = vrot.lane.b32.xlu1 %v417_v60, %s1114_s9 }
  0x97   : > { %409 = vrot.lane.b32.xlu0 %v404_v61, %s1114_s9 }
  0xdd   : > { %v456_v62 = vpop.permute.xlu1 %455 }
  0xde   : > { %v458_v2 = vsub.f32 %v1332_v1, %v456_v62 }
  0xe0   : > { %v461_v7 = vmul.f32 2.0, %v458_v2  ;;  %v480_v33 = vrot.slane %v458_v2, 2 }
  0xe1   : > { %v447_v63 = vpop.permute.xlu0 %446 }
  0xe2   : > { %v452_v4 = vsub.f32 %v1336_v13, %v447_v63  ;;  %v468_v14 = vrot.slane %v461_v7, 1 }
  0xe4   : > { %v459_v10 = vmul.f32 2.0, %v452_v4  ;;  %v477_v29 = vrot.slane %v452_v4, 2 }
  0xe5   : > { %v1383_v0 = vpop.permute.xlu1 %531 }
  0xe6   : > { %v537_v6 = vsub.f32 %v1340_v24, %v1383_v0  ;;  %v465_v19 = vrot.slane %v459_v10, 1 }
  0xe8   : > { %v544_v12 = vmul.f32 2.0, %v537_v6  ;;  %v562_v34 = vrot.slane %v537_v6, 2 }
  0xe9   : > { %v449_v3 = vpop.permute.xlu0 %448 }
  0xea   : > { %v453_v5 = vsub.f32 %v1344_v35, %v449_v3  ;;  %v550_v22 = vrot.slane %v544_v12, 1 }
  0xec   : > { %v460_v8 = vmul.f32 2.0, %v453_v5  ;;  %v478_v23 = vrot.slane %v453_v5, 2 }
  0xed   : > { %v541_v9 = vpop.permute.xlu1 %540 }
  0xee   : > { %v543_v11 = vsub.f32 %v1348_v45, %v541_v9  ;;  %v466_v15 = vrot.slane %v460_v8, 1  ;;  %v481_v52 = vsel %vm391_vm1, %v478_v23, %v480_v33 }
  0xf0   : > { %v546_v16 = vmul.f32 2.0, %v543_v11  ;;  %v467_v25 = vsel %vm378_vm0, %v465_v19, %v466_v15  ;;  %v469_v26 = vsel %vm378_vm0, %v466_v15, %v468_v14  ;;  %v565_v40 = vrot.slane %v543_v11, 2 }
  0xf1   : > { %v534_v17 = vpop.permute.xlu0 %533  ;;  %v495_v18 = vpop.permute.xlu1 %494  ;;  %v472_v37 = vadd.f32 %v467_v25, %v452_v4  ;;  %v473_v38 = vadd.f32 %v469_v26, %v453_v5 }
  0xf2   : > { %v538_v20 = vsub.f32 %v1353_v50, %v534_v17  ;;  %v499_v21 = vadd.f32 %v495_v18, %v1344_v35  ;;  %v553_v27 = vrot.slane %v546_v16, 1  ;;  %v479_v35 = vsel %vm391_vm1, %v477_v29, %v478_v23 }
  0xf3   : > { %v485_v55 = vadd.f32 %v481_v52, %v473_v38  ;;  %v484_v58 = vadd.f32 %v479_v35, %v472_v37 }
  0xf4   : > { %v545_v28 = vmul.f32 2.0, %v538_v20  ;;  %v501_v30 = vadd.f32 %v499_v21, %v449_v3  ;;  %v563_v43 = vrot.slane %v538_v20, 2 }
  0xf5   : > { %v493_v31 = vpop.permute.xlu0 %492  ;;  %v578_v32 = vpop.permute.xlu1 %577  ;;  %v487_v10 = vmul.f32 0.125, %v485_v55  ;;  %v486_v11 = vmul.f32 0.125, %v484_v58 }
  0xf6   : > { %v551_v36 = vrot.slane %v545_v28, 1  ;;  %v498_v39 = vadd.f32 %v493_v31, %v1336_v13  ;;  %v513_v47 = vrot.slane %v501_v30, 2  ;;  %v583_v53 = vadd.f32 %v578_v32, %v1340_v24 }
  0xf7   : > { %v564_v61 = vsel %vm391_vm1, %v562_v34, %v563_v43  ;;  %v566_v2 = vsel %vm391_vm1, %v563_v43, %v565_v40  ;;  %v524_v25 = vmul.f32 %v487_v10, %v487_v10  ;;  %v523_v26 = vmul.f32 %v486_v11, %v486_v11 }
  0xf8   : > { %v552_v41 = vsel %vm378_vm0, %v550_v22, %v551_v36  ;;  %v554_v42 = vsel %vm378_vm0, %v551_v36, %v553_v27  ;;  %v500_v48 = vadd.f32 %v498_v39, %v447_v63  ;;  %v585_v24 = vadd.f32 %v583_v53, %v1383_v0 }
  0xf9   : > { %v557_v44 = vadd.f32 %v552_v41, %v537_v6  ;;  %v558_v46 = vadd.f32 %v554_v42, %v538_v20  ;;  %v505_v49 = vpop.permute.xlu0 %504  ;;  %v590_v51 = vpop.permute.xlu1 %589 }
  0xfa   : > { %v507_v54 = vadd.f32 %v505_v49, %v1332_v1  ;;  %v592_v13 = vadd.f32 %v590_v51, %v1348_v45  ;;  %v512_v60 = vrot.slane %v500_v48, 2  ;;  %v597_v22 = vrot.slane %v585_v24, 2 }
  0xfb   : > { %v569_v63 = vadd.f32 %v564_v61, %v557_v44  ;;  %v570_v5 = vadd.f32 %v566_v2, %v558_v46 }
  0xfc   : > { %v508_v3 = vadd.f32 %v507_v54, %v456_v62  ;;  %v593_v4 = vadd.f32 %v592_v13, %v541_v9  ;;  %v514_v6 = vsel %vm391_vm1, %v512_v60, %v513_v47 }
  0xfd   : > { %v580_v7 = vpop.permute.xlu0 %579  ;;  %v362_v8 = vpop.permute.xlu1 %361  ;;  %v519_v12 = vsub.f32 %v500_v48, %v514_v6  ;;  %v571_v16 = vmul.f32 0.125, %v569_v63  ;;  %v572_v18 = vmul.f32 0.125, %v570_v5 }
  0xfe   : > { %v515_v1 = vrot.slane %v508_v3, 2  ;;  %v584_v45 = vadd.f32 %v580_v7, %v1353_v50  ;;  %v1409_v14 = vsub.f32 %v1364_v56, %v362_v8  ;;  %v600_v9 = vrot.slane %v593_v4, 2 }
  0xff   : > { %v521_v27 = vmul.f32 0.125, %v519_v12  ;;  %v609_v33 = vmul.f32 %v572_v18, %v572_v18  ;;  %v608_v38 = vmul.f32 %v571_v16, %v571_v16 }
 0x100   : > { %v516_v62 = vsel %vm391_vm1, %v513_v47, %v515_v1  ;;  %v586_v15 = vadd.f32 %v584_v45, %v534_v17  ;;  %v373_v20 = vmul.f32 2.0, %v1409_v14  ;;  %v393_v47 = vrot.slane %v1409_v14, 2 }
 0x101   : > { %v520_v19 = vsub.f32 %v501_v30, %v516_v62  ;;  %v360_v21 = vpop.permute.xlu0 %359  ;;  %v408_v0 = vpop.permute.xlu1 %407  ;;  %v525_v42 = vmul.f32 %v521_v27, %v521_v27 }
 0x102   : > { %v598_v23 = vrot.slane %v586_v15, 2  ;;  %v365_v50 = vsub.f32 %v1368_v57, %v360_v21  ;;  %v380_v17 = vrot.slane %v373_v20, 1  ;;  %v413_v40 = vadd.f32 %v408_v0, %v1368_v57 }
 0x103   : > { %v522_v28 = vmul.f32 0.125, %v520_v19  ;;  %v527_v61 = vadd.f32 %v525_v42, %v523_v26 }
 0x104   : > { %v599_v29 = vsel %vm391_vm1, %v597_v22, %v598_v23  ;;  %v601_v31 = vsel %vm391_vm1, %v598_v23, %v600_v9  ;;  %v372_v32 = vmul.f32 2.0, %v365_v50  ;;  %v392_v49 = vrot.slane %v365_v50, 2 }
 0x105   : > { %v604_v30 = vsub.f32 %v585_v24, %v599_v29  ;;  %v605_v34 = vsub.f32 %v586_v15, %v601_v31  ;;  %v369_v36 = vpop.permute.xlu0 %368  ;;  %v420_v37 = vpop.permute.xlu1 %419  ;;  %v526_v43 = vmul.f32 %v522_v28, %v522_v28  ;;  %v415_v57 = vadd.f32 %v413_v40, %v360_v21 }
 0x106   : > { %v379_v35 = vrot.slane %v372_v32, 1  ;;  %v371_v39 = vsub.f32 %v1375_v59, %v369_v36  ;;  %v422_v41 = vadd.f32 %v420_v37, %v1375_v59  ;;  %v394_v6 = vsel %vm391_vm1, %v392_v49, %v393_v47 }
 0x107   : > { %v606_v44 = vmul.f32 0.125, %v604_v30  ;;  %v607_v46 = vmul.f32 0.125, %v605_v34  ;;  %v528_v4 = vadd.f32 %v526_v43, %v524_v25  ;;  %v427_v11 = vrot.slane %v415_v57, 2 }
 0x108   : > { %v381_v48 = vsel %vm378_vm0, %v379_v35, %v380_v17  ;;  %v374_v51 = vmul.f32 2.0, %v371_v39  ;;  %v423_v55 = vadd.f32 %v422_v41, %v369_v36  ;;  %v395_v60 = vrot.slane %v371_v39, 2 }
 0x109   : > { %v610_v52 = vmul.f32 %v606_v44, %v606_v44  ;;  %v611_v53 = vmul.f32 %v607_v46, %v607_v46  ;;  %v386_v54 = vadd.f32 %v381_v48, %v365_v50  ;;  %v410_v13 = vpop.permute.xlu0 %409 }
 0x10a   : > { %v382_v58 = vrot.slane %v374_v51, 1  ;;  %v414_v59 = vadd.f32 %v410_v13, %v1364_v56  ;;  %v430_v5 = vrot.slane %v423_v55, 2  ;;  %v396_v62 = vsel %vm391_vm1, %v393_v47, %v395_v60 }
 0x10b   : > { %v613_v2 = vadd.f32 %v611_v53, %v609_v33  ;;  %v612_v3 = vadd.f32 %v610_v52, %v608_v38  ;;  %v399_v24 = vadd.f32 %v394_v6, %v386_v54 }
 0x10c   : > { %v416_v63 = vadd.f32 %v414_v59, %v362_v8  ;;  %v383_v7 = vsel %vm378_vm0, %v380_v17, %v382_v58 }
 0x10d   : > { %v387_v1 = vadd.f32 %v383_v7, %v1409_v14  ;;  %v614_v45 = vsub.f32 %v527_v61, %v612_v3  ;;  %v615_v10 = vsub.f32 %v528_v4, %v613_v2  ;;  %v401_v18 = vmul.f32 0.125, %v399_v24 }
 0x10e   : > { %v428_v12 = vrot.slane %v416_v63, 2 }
 0x10f   : > { %v400_v56 = vadd.f32 %v396_v62, %v387_v1  ;;  %v616_v9 = vand.u32 2147483647, %v614_v45  ;;  %v617_v15 = vand.u32 2147483647, %v615_v10  ;;  %v438_v25 = vmul.f32 %v401_v18, %v401_v18 }
 0x110   : > { %v429_v16 = vsel %vm391_vm1, %v427_v11, %v428_v12  ;;  %v431_v8 = vsel %vm391_vm1, %v428_v12, %v430_v5 }
 0x111   : > { %v434_v19 = vsub.f32 %v415_v57, %v429_v16  ;;  %v402_v20 = vmul.f32 0.125, %v400_v56  ;;  %v435_v21 = vsub.f32 %v416_v63, %v431_v8  ;;  %v620_v0 = vmul.f32 3.0, %v616_v9 }
 0x112   : > { %v621_v22 = vmul.f32 3.0, %v617_v15  ;;  %v824_v33 = vadd.f32 -0.055555556, %v616_v9  ;;  %vm618_vm3 = vcmp.lt.f32.partialorder %v616_v9, 0.11111111 }
 0x113   : > { %v436_v14 = vmul.f32 0.125, %v434_v19  ;;  %v437_v23 = vmul.f32 0.125, %v435_v21  ;;  %v622_v50 = vmul.f32 0.5, %v620_v0  ;;  %v439_v27 = vmul.f32 %v402_v20, %v402_v20 }
 0x114   : > { %v623_v31 = vmul.f32 0.5, %v621_v22  ;;  %v825_v38 = vadd.f32 -0.055555556, %v617_v15  ;;  %vm619_vm4 = vcmp.lt.f32.partialorder %v617_v15, 0.11111111 }
 0x115   : > { %v440_v26 = vmul.f32 %v436_v14, %v436_v14  ;;  %v441_v28 = vmul.f32 %v437_v23, %v437_v23  ;;  %v624_v29 = vmul.f32 %v622_v50, %v620_v0 }
 0x116   : > { %v625_v37 = vmul.f32 %v623_v31, %v621_v22 }
 0x117   : > { %v442_v17 = vadd.f32 %v440_v26, %v438_v25  ;;  %v443_v32 = vadd.f32 %v441_v28, %v439_v27  ;;  %v628_v36 = vsel %vm618_vm3, %v624_v29, %v824_v33 }
 0x118   : > { %v645_v35 = vsel %vm630_vm2, %v628_v36, 0.0  ;;  %v629_v39 = vsel %vm619_vm4, %v625_v37, %v825_v38 }
 0x119   : > { %v631_v30 = vsel %vm630_vm2, %v442_v17, 0.0  ;;  %v634_v34 = vsel %vm630_vm2, %v443_v32, 0.0  ;;  %v648_v40 = vsel %vm630_vm2, %v629_v39, 0.0 }
 0x11a   : > { %632 = vadd.xlane.f32.xlu0 %v631_v30  ;;  %635 = vadd.xlane.f32.xlu1 %v634_v34 }
 0x11e   : > { %646 = vadd.xlane.f32.xlu0 %v645_v35 }
 0x122   : > { %649 = vadd.xlane.f32.xlu0 %v648_v40 }
 0x1a7   : > { %v633_v41 = vpop.xlane.xlu0 %632  ;;  %v636_v42 = vpop.xlane.xlu1 %635 }
 0x1a8   : > { %v637_v43 = vadd.f32 %v636_v42, %v633_v41 }
 0x1aa   : > { %v638_v44 = vrot.slane %v637_v43, 4 }
 0x1ab   : > { %v647_v46 = vpop.xlane.xlu0 %646 }
 0x1ac   : > { %v639_v47 = vadd.f32 %v638_v44, %v637_v43 }
 0x1ae   : > { %v640_v48 = vrot.slane %v639_v47, 2 }
 0x1af   : > { %v650_v49 = vpop.xlane.xlu0 %649 }
 0x1b0   : > { %v641_v51 = vadd.f32 %v640_v48, %v639_v47  ;;  %v651_v52 = vadd.f32 %v650_v49, %v647_v46 }
 0x1b2   : > { %v642_v53 = vrot.slane %v641_v51, 1  ;;  %v652_v54 = vrot.slane %v651_v52, 4 }
 0x1b4   : > { %v643_v13 = vadd.f32 %v642_v53, %v641_v51  ;;  %v653_v55 = vadd.f32 %v652_v54, %v651_v52 }
 0x1b6   : > { %v654_v58 = vrot.slane %v653_v55, 2  ;;  %644 = vst [vmem:[%s232_s28] sm:$0xff] %v643_v13 }
 0x1b7   : > { %1018 = shalt.err (!%p1015_p11)
}
 0x1b8   : > { %s1019_s4 = scalar_lea.hbm %s1441_s27, 128  ;;  %s1023_s22 = scalar_lea.hbm %s1520_s2, 256 }
 0x1b9   : > { %p1020_p3 = scmp.ne.s32.totalorder %s1441_s27, %s1019_s4  ;;  %p1024_p2 = scmp.lt.u32.totalorder %s1441_s27, %s1520_s2 }
 0x1ba   : > { %p1025_p4 = scmp.lt.u32.totalorder %s1023_s22, %s1019_s4  ;;  %p1027_p13 = scmp.lt.u32.totalorder %s1019_s4, %s1441_s27 }
 0x1bb   : > { %p1021_p8 = pnand %p1020_p3, %p1530_p1 }
 0x1bc   : > { %p1026_p6 = por %p1025_p4, %p1024_p2 }
 0x1bd   : > { %p1022_p0 = pneg %p1021_p8 }
 0x1be   : > { %p1028_p12 = por %p1027_p13, %p1026_p6 }
 0x1c0   : > { %p1029_p10 = pnand %p1028_p12, %p1022_p0 }
 0x1c2   : > { %1032 = shalt.err (!%p1029_p10)
}
 0x1c3   : > { %841 = dma.vmem_to_hbm [thread:$0]  (%p1530_p1), %s1443_s30, 128, %s1441_s27, %s660_s17   ;;  %v655_v60 = vadd.f32 %v654_v58, %v653_v55 }
 0x1c4   : > { %s239_s5 = scalar_lea.vmem [#allocation8], %s822_s10  ;;  %s1474_s29 = scalar_lea.hbm %s1521_s3, %s828_s19 }
 0x1c5   : > { %s691_s11 = sshll.u32 %s239_s5, 4  ;;  %v656_v57 = vrot.slane %v655_v60, 1  ;;  %s665_s26 = scalar_lea.sflag [#allocation9], %s1291_s6  ;;  %s1476_s11 = int_to_ptr.vmem [resolvable:$true] %s691_s11 }
 0x1c6   : > { %s1033_s30 = scalar_lea.vmem %s1476_s11, 128  ;;  %s1116_s10 = smov [#allocation8]  }
 0x1c7   : > { %v657_v59 = vadd.f32 %v656_v57, %v655_v60  ;;  %p1034_p5 = scmp.ne.s32.totalorder %s1476_s11, %s1033_s30  ;;  %s1037_s27 = sshll.u32 %s1116_s10, 4  ;;  %s1038_s27 = int_to_ptr.vmem [resolvable:$false] %s1037_s27 }
 0x1c8   : > { %s1039_s16 = scalar_lea.vmem %s1038_s27, 256  ;;  %p1040_p11 = scmp.lt.s32.totalorder %s1476_s11, %s1038_s27 }
 0x1c9   : > { %658 = vst [vmem:[%s239_s5] sm:$0xff] %v657_v59  ;;  %p1035_p7 = pnand %p1034_p5, %p1530_p1  ;;  %p1041_p3 = scmp.lt.s32.totalorder %s1039_s16, %s1033_s30 }
 0x1cb   : > { %p1036_p9 = pneg %p1035_p7  ;;  %p1042_p8 = por %p1041_p3, %p1040_p11 }
 0x1cd   : > { %p1043_p0 = pnand %p1042_p8, %p1036_p9 }
 0x1cf   : > { %1046 = shalt.err (!%p1043_p0)
}
 0x1d0   : > { %s1047_s6 = scalar_lea.hbm %s1474_s29, 128  ;;  %s1051_s4 = scalar_lea.hbm %s1521_s3, 256 }
 0x1d1   : > { %p1048_p2 = scmp.ne.s32.totalorder %s1474_s29, %s1047_s6  ;;  %p1052_p13 = scmp.lt.u32.totalorder %s1474_s29, %s1521_s3 }
 0x1d2   : > { %p1053_p12 = scmp.lt.u32.totalorder %s1051_s4, %s1047_s6  ;;  %p1055_p5 = scmp.lt.u32.totalorder %s1047_s6, %s1474_s29 }
 0x1d3   : > { %p1049_p4 = pnand %p1048_p2, %p1530_p1 }
 0x1d4   : > { %p1054_p10 = por %p1053_p12, %p1052_p13 }
 0x1d5   : > { %p1050_p6 = pneg %p1049_p4 }
 0x1d6   : > { %p1056_p7 = por %p1055_p5, %p1054_p10 }
 0x1d8   : > { %p1057_p9 = pnand %p1056_p7, %p1050_p6 }
 0x1da   : > { %1060 = shalt.err (!%p1057_p9)
}
 0x1db   : > { %842 = dma.vmem_to_hbm [thread:$0]  (%p1530_p1), %s1476_s11, 128, %s1474_s29, %s665_s26  }
 0x1dc PF: > { %s703_s22 = sand.u32 1, %s1095_s12   ;;  %p1531_p11 = scmp.ne.s32.totalorder %s1526_s24, 0 }
 0x1dd   : > { %p1532_p3 = scmp.ge.s32.totalorder %s1107_s15, 2  ;;  %s704_s9 = scalar_lea.sflag [#allocation4], %s703_s22 }
 0x1df   : > { %p853_p8 = pnand %p1532_p3, %p1531_p11 }
 0x1e1   : > { %1086 = dma.done.wait (!%p853_p8), %s704_s9, 128  }
 0x1e2   : > { %1088 = vsyncadd (!%p853_p8), %s704_s9, 4294967168  ;;  %s713_s28 = scalar_lea.sflag [#allocation9], %s703_s22 }
 0x1e3   : > { %1090 = dma.done.wait (!%p853_p8), %s713_s28, 128  }
 0x1e4   : > { %1092 = vsyncadd (!%p853_p8), %s713_s28, 4294967168  ;;  %p23_p1 = scmp.ge.s32.totalorder %s1162_s18, 4   ;;  %s1533_s12 = smov %s1099_s13 }
 0x1e5   : > { %s1534_s13 = smov %s1103_s14  ;;  %s1535_s14 = smov %s1174_s21 }
 0x1e6   : > { %s1536_s15 = smov %s1162_s18  ;;  %25 = sbr.rel (!%p23_p1) target bundleno = 9 (0x9), region = 103 }
 0x1ed   :  { %718 = vsyncpa [#allocation3], 1 }
 0x1ee   :  { %720 = vsyncpa [#allocation3 + $0x1], 1 }
 0x1ef   :  { %721 = vsyncpa [#allocation6], 1 }
 0x1f0   :  { %723 = vsyncpa [#allocation6 + $0x1], 1 }
 0x1f1   :  { %724 = vsyncpa [#allocation4], 1 }
 0x1f2   :  { %726 = vsyncpa [#allocation4 + $0x1], 1 }
 0x1f3   :  { %727 = vsyncpa [#allocation9], 1 }
 0x1f4   :  { %729 = vsyncpa [#allocation9 + $0x1], 1 }

</bundles_post_ra>
